<compile_context>
chip_gen: v7x
topology: tpu7x:2x2x1
jax: 0.10.0
libtpu: 0.0.40
codegen_flags: <defaults>
</compile_context>

<pallas_src>
import jax
import jax.numpy as jnp
from jax.experimental import pallas as pl
from jax.experimental.pallas import tpu as pltpu

HIDDEN = 256


def _critic_kernel(x_ref, w1_ref, w2_ref, p_ref, q_ref):
    """x:(B, obs+act) f32, w1:(obs+act, 2H) bf16, w2:(2, H, H) bf16,
    p:(8, 2H) f32 slab [row0=b1, row1=b2, row2=w3, row3 lanes0:2=b3, rest 0],
    q:(B, 2) f32."""
    b1 = p_ref[0:1, :]            # (1, 512)
    b2 = p_ref[1:2, :]            # (1, 512)
    w3 = p_ref[2:3, :]            # (1, 512)  lanes 0:256 = head1, 256:512 = head2
    b3 = p_ref[3:4, 0:2]          # (1, 2)

    # ---- layer 1, both heads fused: one (B, 2*HIDDEN) MXU pass, f32 acc -----
    x_bf = x_ref[...].astype(jnp.bfloat16)
    h1 = jnp.dot(x_bf, w1_ref[...], preferred_element_type=jnp.float32) + b1
    h1 = jnp.maximum(h1, 0.0)
    h1_bf = h1.astype(jnp.bfloat16)

    # ---- layer 2: two per-head (256,256) MXU passes, one 512-lane epilogue --
    d1 = jnp.dot(h1_bf[:, :HIDDEN], w2_ref[0], preferred_element_type=jnp.float32)
    d2 = jnp.dot(h1_bf[:, HIDDEN:], w2_ref[1], preferred_element_type=jnp.float32)
    h2 = jnp.maximum(jnp.concatenate([d1, d2], axis=-1) + b2, 0.0)   # (B, 512)

    # ---- layer 3 (256 -> 1 per head): VPU multiply + cross-lane reduces -----
    s = h2 * w3
    q1 = jnp.sum(s[:, :HIDDEN], axis=-1, keepdims=True)
    q2 = jnp.sum(s[:, HIDDEN:], axis=-1, keepdims=True)
    q_ref[...] = jnp.concatenate([q1, q2], axis=-1) + b3             # one store


def pack_params(params):
    """Repack per-head f32 nn.Linear params into the kernel's fused layout.

    Per-head params are (w1, b1, w2, b2, w3, b3) with weights already in
    (in_features, out_features) layout and biases as (1, out_features).
    Returns (w1 bf16 (in, 512), w2 bf16 (2, 256, 256), slab f32 (8, 512)).
    """
    w1a, b1a, w2a, b2a, w3a, b3a = params["q1"]
    w1b, b1b, w2b, b2b, w3b, b3b = params["q2"]

    w1 = jnp.concatenate([w1a, w1b], axis=1).astype(jnp.bfloat16)   # (in, 512)
    w2 = jnp.stack([w2a, w2b]).astype(jnp.bfloat16)                 # (2, 256, 256)

    slab = jnp.zeros((8, 2 * HIDDEN), jnp.float32)
    slab = slab.at[0].set(jnp.concatenate([b1a.reshape(-1), b1b.reshape(-1)]))
    slab = slab.at[1].set(jnp.concatenate([b2a.reshape(-1), b2b.reshape(-1)]))
    slab = slab.at[2].set(jnp.concatenate([w3a.reshape(-1), w3b.reshape(-1)]))
    slab = slab.at[3, 0].set(b3a.reshape(())).at[3, 1].set(b3b.reshape(()))
    return (w1, w2, slab)


@jax.jit
def critic_forward(o, a, packed):
    """Returns (q1, q2), each (B, 1) float32 — same semantics as Critic.forward."""
    w1, w2, slab = packed
    x = jnp.concatenate([o, a], axis=-1).astype(jnp.float32)
    B, in_dim = x.shape

    flops = 2 * B * (in_dim * 2 * HIDDEN + 2 * HIDDEN * HIDDEN) + 6 * B * 2 * HIDDEN
    bytes_accessed = (x.size * 4 + w1.size * 2 + w2.size * 2 + slab.size * 4 + B * 2 * 4)
    vmem = pl.BlockSpec(memory_space=pltpu.MemorySpace.VMEM)

    q = pl.pallas_call(
        _critic_kernel,
        out_shape=jax.ShapeDtypeStruct((B, 2), jnp.float32),
        in_specs=[vmem, vmem, vmem, vmem],
        out_specs=vmem,
        cost_estimate=pl.CostEstimate(flops=int(flops), transcendentals=0,
                                      bytes_accessed=int(bytes_accessed)),
    )(x, w1, w2, slab)
    return q[:, 0:1], q[:, 1:2]


def init_mlp_params(key, in_dim):
    """Deterministic init mimicking nn.Linear default (uniform +/- 1/sqrt(fan_in))."""
    dims = [(in_dim, HIDDEN), (HIDDEN, HIDDEN), (HIDDEN, 1)]
    keys = jax.random.split(key, 2 * len(dims))
    params = []
    for i, (fan_in, fan_out) in enumerate(dims):
        bound = 1.0 / jnp.sqrt(float(fan_in))
        w = jax.random.uniform(keys[2 * i], (fan_in, fan_out),
                               minval=-bound, maxval=bound, dtype=jnp.float32)
        b = jax.random.uniform(keys[2 * i + 1], (1, fan_out),
                               minval=-bound, maxval=bound, dtype=jnp.float32)
        params += [w, b]
    return tuple(params)


def reference_forward_bf16(o, a, params):
    """Pure-JAX reference mirroring the kernel's numerics (bf16 matmul inputs,
    f32 accumulation, f32 biases/activations)."""
    x = jnp.concatenate([o, a], axis=-1).astype(jnp.float32)

    def mm(h, w):
        return jnp.dot(h.astype(jnp.bfloat16), w.astype(jnp.bfloat16),
                       preferred_element_type=jnp.float32)

    def mlp(p):
        w1, b1, w2, b2, w3, b3 = p
        h = jnp.maximum(mm(x, w1) + b1, 0.0)
        h = jnp.maximum(mm(h, w2) + b2, 0.0)
        return jnp.sum(h * w3.reshape(1, -1), axis=-1, keepdims=True) + b3

    return mlp(params["q1"]), mlp(params["q2"])


def reference_forward_f32(o, a, params):
    """Full-precision reference (matches the PyTorch module exactly in f32)."""
    x = jnp.concatenate([o, a], axis=-1).astype(jnp.float32)

    def mlp(p):
        w1, b1, w2, b2, w3, b3 = p
        h = jnp.maximum(x @ w1 + b1, 0.0)
        h = jnp.maximum(h @ w2 + b2, 0.0)
        return h @ w3 + b3

    return mlp(params["q1"]), mlp(params["q2"])


if __name__ == "__main__":
    key = jax.random.PRNGKey(0)
    k_o, k_a, k_q1, k_q2 = jax.random.split(key, 4)

    batch = 8
    obs_dim = 12
    act_dim = 4

    o = jax.random.normal(k_o, (batch, obs_dim), dtype=jnp.float32)
    a = jax.random.normal(k_a, (batch, act_dim), dtype=jnp.float32)

    params = {
        "q1": init_mlp_params(k_q1, obs_dim + act_dim),
        "q2": init_mlp_params(k_q2, obs_dim + act_dim),
    }
    packed = pack_params(params)

    q1, q2 = critic_forward(o, a, packed)
    q1 = jax.block_until_ready(q1)
    q2 = jax.block_until_ready(q2)
    assert q1.shape == (batch, 1) and q2.shape == (batch, 1)

    # Parity baseline: reference with matching (bf16 matmul, f32 accum) numerics.
    r1, r2 = reference_forward_bf16(o, a, params)
    assert jnp.allclose(q1, r1, atol=2e-3, rtol=2e-3)
    assert jnp.allclose(q2, r2, atol=2e-3, rtol=2e-3)

    # Loose check against the full-f32 reference (expected bf16 precision loss).
    f1, f2 = reference_forward_f32(o, a, params)
    assert jnp.allclose(q1, f1, atol=2e-2, rtol=2e-2)
    assert jnp.allclose(q2, f2, atol=2e-2, rtol=2e-2)

    print("KERNEL_OK")
</pallas_src>

<mosaic_0001>
module attributes {stable_mosaic.version = 11 : i64} {
  func.func @_critic_kernel(%arg0: memref<8x16xf32, #tpu.memory_space<vmem>>, %arg1: memref<16x512xbf16, #tpu.memory_space<vmem>>, %arg2: memref<2x256x256xbf16, #tpu.memory_space<vmem>>, %arg3: memref<8x512xf32, #tpu.memory_space<vmem>>, %arg4: memref<8x2xf32, #tpu.memory_space<vmem>>) attributes {dimension_semantics = [], scalar_prefetch = 0 : i64, scratch_operands = 0 : i64, tpu.core_type = #tpu.core_type<tc>} {
    %c0 = arith.constant 0 : index
    %c0_0 = arith.constant 0 : index
    %0 = vector.load %arg3[%c0, %c0_0] : memref<8x512xf32, #tpu.memory_space<vmem>>, vector<1x512xf32>
    %c1 = arith.constant 1 : index
    %c0_1 = arith.constant 0 : index
    %1 = vector.load %arg3[%c1, %c0_1] : memref<8x512xf32, #tpu.memory_space<vmem>>, vector<1x512xf32>
    %c2 = arith.constant 2 : index
    %c0_2 = arith.constant 0 : index
    %2 = vector.load %arg3[%c2, %c0_2] : memref<8x512xf32, #tpu.memory_space<vmem>>, vector<1x512xf32>
    %c3 = arith.constant 3 : index
    %c0_3 = arith.constant 0 : index
    %3 = vector.load %arg3[%c3, %c0_3] : memref<8x512xf32, #tpu.memory_space<vmem>>, vector<1x2xf32>
    %c0_4 = arith.constant 0 : index
    %c0_5 = arith.constant 0 : index
    %4 = vector.load %arg0[%c0_4, %c0_5] : memref<8x16xf32, #tpu.memory_space<vmem>>, vector<8x16xf32>
    %5 = arith.truncf %4 : vector<8x16xf32> to vector<8x16xbf16>
    %c0_6 = arith.constant 0 : index
    %c0_7 = arith.constant 0 : index
    %6 = vector.load %arg1[%c0_6, %c0_7] : memref<16x512xbf16, #tpu.memory_space<vmem>>, vector<16x512xbf16>
    %cst = arith.constant dense<0.000000e+00> : vector<8x512xf32>
    %7 = tpu.matmul %5, %6, %cst {dimension_numbers = #tpu.dot_dimension_numbers<[1], [0], [0], [1], [0, 0, 1, 1], [], []>} : vector<8x16xbf16>, vector<16x512xbf16>, vector<8x512xf32> -> vector<8x512xf32>
    %8 = vector.broadcast %0 : vector<1x512xf32> to vector<8x512xf32>
    %9 = arith.addf %7, %8 : vector<8x512xf32>
    %cst_8 = arith.constant 0.000000e+00 : f32
    %10 = vector.broadcast %cst_8 : f32 to vector<8x512xf32>
    %11 = arith.maximumf %9, %10 : vector<8x512xf32>
    %12 = arith.truncf %11 : vector<8x512xf32> to vector<8x512xbf16>
    %13 = vector.extract_strided_slice %12 {offsets = [0, 0], sizes = [8, 256], strides = [1, 1]} : vector<8x512xbf16> to vector<8x256xbf16>
    %c0_9 = arith.constant 0 : index
    %c0_10 = arith.constant 0 : index
    %c0_11 = arith.constant 0 : index
    %14 = vector.load %arg2[%c0_9, %c0_10, %c0_11] : memref<2x256x256xbf16, #tpu.memory_space<vmem>>, vector<1x256x256xbf16>
    %15 = vector.shape_cast %14 : vector<1x256x256xbf16> to vector<256x256xbf16>
    %cst_12 = arith.constant dense<0.000000e+00> : vector<8x256xf32>
    %16 = tpu.matmul %13, %15, %cst_12 {dimension_numbers = #tpu.dot_dimension_numbers<[1], [0], [0], [1], [0, 0, 1, 1], [], []>} : vector<8x256xbf16>, vector<256x256xbf16>, vector<8x256xf32> -> vector<8x256xf32>
    %17 = vector.extract_strided_slice %12 {offsets = [0, 256], sizes = [8, 256], strides = [1, 1]} : vector<8x512xbf16> to vector<8x256xbf16>
    %c1_13 = arith.constant 1 : index
    %c0_14 = arith.constant 0 : index
    %c0_15 = arith.constant 0 : index
    %18 = vector.load %arg2[%c1_13, %c0_14, %c0_15] : memref<2x256x256xbf16, #tpu.memory_space<vmem>>, vector<1x256x256xbf16>
    %19 = vector.shape_cast %18 : vector<1x256x256xbf16> to vector<256x256xbf16>
    %cst_16 = arith.constant dense<0.000000e+00> : vector<8x256xf32>
    %20 = tpu.matmul %17, %19, %cst_16 {dimension_numbers = #tpu.dot_dimension_numbers<[1], [0], [0], [1], [0, 0, 1, 1], [], []>} : vector<8x256xbf16>, vector<256x256xbf16>, vector<8x256xf32> -> vector<8x256xf32>
    %21 = tpu.concatenate %16, %20 in 1 : vector<8x256xf32>, vector<8x256xf32> -> vector<8x512xf32>
    %22 = vector.broadcast %1 : vector<1x512xf32> to vector<8x512xf32>
    %23 = arith.addf %21, %22 : vector<8x512xf32>
    %cst_17 = arith.constant 0.000000e+00 : f32
    %24 = vector.broadcast %cst_17 : f32 to vector<8x512xf32>
    %25 = arith.maximumf %23, %24 : vector<8x512xf32>
    %26 = vector.broadcast %2 : vector<1x512xf32> to vector<8x512xf32>
    %27 = arith.mulf %25, %26 : vector<8x512xf32>
    %28 = vector.extract_strided_slice %27 {offsets = [0, 0], sizes = [8, 256], strides = [1, 1]} : vector<8x512xf32> to vector<8x256xf32>
    %cst_18 = arith.constant dense<0.000000e+00> : vector<8xf32>
    %29 = vector.multi_reduction <add>, %28, %cst_18 [1] : vector<8x256xf32> to vector<8xf32>
    %30 = vector.shape_cast %29 : vector<8xf32> to vector<8x1xf32>
    %31 = vector.extract_strided_slice %27 {offsets = [0, 256], sizes = [8, 256], strides = [1, 1]} : vector<8x512xf32> to vector<8x256xf32>
    %cst_19 = arith.constant dense<0.000000e+00> : vector<8xf32>
    %32 = vector.multi_reduction <add>, %31, %cst_19 [1] : vector<8x256xf32> to vector<8xf32>
    %33 = vector.shape_cast %32 : vector<8xf32> to vector<8x1xf32>
    %34 = tpu.concatenate %30, %33 in 1 : vector<8x1xf32>, vector<8x1xf32> -> vector<8x2xf32>
    %35 = vector.broadcast %3 : vector<1x2xf32> to vector<8x2xf32>
    %36 = arith.addf %34, %35 : vector<8x2xf32>
    %c0_20 = arith.constant 0 : index
    %c0_21 = arith.constant 0 : index
    %37 = vector.load %arg4[%c0_20, %c0_21] : memref<8x2xf32, #tpu.memory_space<vmem>>, vector<8x2xf32>
    tpu.vector_store %arg4[%c0_20, %c0_21], %36 {strides = array<i32>} : memref<8x2xf32, #tpu.memory_space<vmem>>, vector<8x2xf32>,
    return
  }
}

</mosaic_0001>

<bundles_post_ra>
// kernel: critic_forward.1
= control target key start
LH: loop header
LB: loop body
LE: loop exit
PB: predicated region body
PF: predicated region fallthrough
CT: control target
= control target key end

     0   :  { %9 = vsyncpa [#allocation3], 0  ;;  %s1026_s0 = inlined_call_operand.vmem [shape: f32[8,16], index: 0, kind: input, shape index: {}]   ;;  %s1027_s1 = inlined_call_operand.vmem [shape: bf16[16,512], index: 1, kind: input, shape index: {}]   ;;  %s1028_s2 = inlined_call_operand.hbm [shape: bf16[2,256,256], index: 2, kind: input, shape index: {}]   ;;  %s1029_s3 = inlined_call_operand.hbm [shape: f32[8,512], index: 3, kind: input, shape index: {}]   ;;  %s1030_s4 = inlined_call_operand.vmem [shape: f32[8,2], index: 4, kind: output, shape index: {}]  }
   0x1   :  { %10 = vsyncpa [#allocation5], 0  ;;  %s954_s15 = smov [#allocation2]   ;;  %s906_s19 = scalar_lea.hbm %s1028_s2, 8192 }
   0x2   :  { %s20_s16 = sshll.u32 %s954_s15, 4  ;;  %p907_p0 = scmp.ne.s32.totalorder %s1028_s2, %s906_s19  ;;  %s21_s16 = int_to_ptr.vmem [resolvable:$true] %s20_s16 }
   0x3   :  { %p910_p1 = scmp.lt.u32.totalorder %s906_s19, %s1028_s2 }
   0x5   :  { %p912_p2 = pnand %p910_p1, %p907_p0 }
   0x7   :  { %915 = shalt.err (!%p912_p2)
}
   0x8   :  { %s916_s24 = scalar_lea.vmem %s21_s16, 8192  ;;  %p921_p4 = scmp.lt.s32.totalorder %s21_s16, %s21_s16 }
   0x9   :  { %p917_p3 = scmp.ne.s32.totalorder %s21_s16, %s916_s24  ;;  %p922_p5 = scmp.lt.s32.totalorder %s916_s24, %s916_s24 }
   0xb   :  { %p923_p6 = por %p922_p5, %p921_p4 }
   0xd   :  { %p924_p7 = pnand %p923_p6, %p917_p3 }
   0xf   :  { %927 = shalt.err (!%p924_p7)
}
  0x10   :  { %s955_s25 = smov 128   ;;  %s956_s26 = smov 8  }
  0x11   :  { %26 = dma.hbm_to_vmem [thread:$0]  %s1028_s2, 8192, %s21_s16, [#allocation3], %s955_s25, %s955_s25, %s956_s26  }
  0x12   :  { %s957_s29 = smov [#allocation4]   ;;  %s928_s7 = scalar_lea.hbm %s1029_s3, 512 }
  0x13   :  { %s33_s30 = sshll.u32 %s957_s29, 4  ;;  %p929_p8 = scmp.ne.s32.totalorder %s1029_s3, %s928_s7  ;;  %s34_s30 = int_to_ptr.vmem [resolvable:$true] %s33_s30 }
  0x14   :  { %p932_p9 = scmp.lt.u32.totalorder %s928_s7, %s1029_s3 }
  0x16   :  { %p934_p10 = pnand %p932_p9, %p929_p8 }
  0x18   :  { %937 = shalt.err (!%p934_p10)
}
  0x19   :  { %s938_s12 = scalar_lea.vmem %s34_s30, 512  ;;  %p943_p12 = scmp.lt.s32.totalorder %s34_s30, %s34_s30 }
  0x1a   :  { %p939_p11 = scmp.ne.s32.totalorder %s34_s30, %s938_s12  ;;  %p944_p13 = scmp.lt.s32.totalorder %s938_s12, %s938_s12 }
  0x1c   :  { %p945_p0 = por %p944_p13, %p943_p12 }
  0x1e   :  { %p946_p1 = pnand %p945_p0, %p939_p11 }
  0x20   :  { %949 = shalt.err (!%p946_p1)
}
  0x21   :  { %36 = dma.hbm_to_vmem [thread:$0]  %s1029_s3, 512, %s34_s30, [#allocation5]  }
  0x22   :  { %950 = dma.done.wait [#allocation3], 8192  }
  0x23   :  { %951 = vsyncadd [#allocation3], 4294959104 }
  0x24   :  { %952 = dma.done.wait [#allocation5], 512  }
  0x25   :  { %953 = vsyncadd [#allocation5], 4294966784  ;;  %v958_v0 = vmov 0   ;;  %v804_v1 = vld [vmem:[%s1027_s1 + $0x4] ss:$16 sps:$4 sm:$0xff]   ;;  %vm97_vm0 = vcmask 130048  }
  0x26   :  { %133 = vmatprep.mubr.bf16.mxu0 %v958_v0  ;;  %174 = vmatprep.mubr.bf16.mxu1 %v958_v0  ;;  %v806_v2 = vld [vmem:[%s1027_s1 + $0xc] ss:$16 sps:$4 sm:$0xff]   ;;  %v808_v3 = vld [vmem:[%s1027_s1] ss:$16 sps:$4 sm:$0xff]   ;;  %v809_v4 = vld [vmem:[%s1027_s1 + $0x8] ss:$16 sps:$4 sm:$0xff]  }
  0x27   :  { %101 = vmatprep.subr.bf16.mxu0 %v804_v1  ;;  %v50_v5 = vld [vmem:[%s1026_s0] sm:$0xff]  ;;  %142 = vmatprep.subr.bf16.mxu1 %v806_v2  ;;  %v818_v11 = vld [vmem:[#allocation2 + $0x14] ss:$8 sps:$4 sm:$0xff]   ;;  %v816_v12 = vld [vmem:[#allocation2 + $0x10] ss:$8 sps:$4 sm:$0xff]   ;;  %vm718_vm1 = vcmask 7168  }
  0x28   :  { %v51_v6 = vpack.c.bf16 %v50_v5, %v50_v5  ;;  %v810_v7 = vld [vmem:[#allocation2] ss:$8 sps:$4 sm:$0xff]   ;;  %102 = vmatpush1.bf16.msra.mxu0 %v808_v3  ;;  %143 = vmatpush1.bf16.msra.mxu1 %v809_v4  ;;  %v812_v8 = vld [vmem:[#allocation2 + $0x4] ss:$8 sps:$4 sm:$0xff]   ;;  %v821_v13 = vld [vmem:[#allocation2 + $0x114] ss:$8 sps:$4 sm:$0xff]  }
  0x29   :  { %v813_v9 = vld [vmem:[#allocation2 + $0x100] ss:$8 sps:$4 sm:$0xff]   ;;  %v815_v10 = vld [vmem:[#allocation2 + $0x104] ss:$8 sps:$4 sm:$0xff]   ;;  %383 = vmatprep.subr.bf16.mxu0 %v812_v8  ;;  %v819_v14 = vld [vmem:[#allocation2 + $0x110] ss:$8 sps:$4 sm:$0xff]  }
  0x2a   :  { %617 = vmatprep.subr.bf16.mxu1 %v815_v10  ;;  %v824_v15 = vld [vmem:[#allocation2 + $0x24] ss:$8 sps:$4 sm:$0xff]   ;;  %v822_v17 = vld [vmem:[#allocation2 + $0x20] ss:$8 sps:$4 sm:$0xff]   ;;  %v830_v19 = vld [vmem:[#allocation2 + $0x34] ss:$8 sps:$4 sm:$0xff]  }
  0x2b   :  { %733 = vmatmul.mubr.msk.bf16.vlgmr.msra.gmra.mrb[0].mxu0 %vm97_vm0, %v51_v6  ;;  %734 = vmatmul.mubr.msk.bf16.vlgmr.msra.gmra.mrb[0].mxu1 %vm97_vm0, %v51_v6  ;;  %v827_v16 = vld [vmem:[#allocation2 + $0x124] ss:$8 sps:$4 sm:$0xff]   ;;  %v825_v18 = vld [vmem:[#allocation2 + $0x120] ss:$8 sps:$4 sm:$0xff]   ;;  %v833_v20 = vld [vmem:[#allocation2 + $0x134] ss:$8 sps:$4 sm:$0xff]  }
  0x2c   :  { %384 = vmatpush1.bf16.msra.mxu0 %v810_v7  ;;  %618 = vmatpush1.bf16.msra.mxu1 %v813_v9  ;;  %v828_v21 = vld [vmem:[#allocation2 + $0x30] ss:$8 sps:$4 sm:$0xff]   ;;  %v836_v23 = vld [vmem:[#allocation2 + $0x44] ss:$8 sps:$4 sm:$0xff]   ;;  %v834_v25 = vld [vmem:[#allocation2 + $0x40] ss:$8 sps:$4 sm:$0xff]   ;;  %v57_v7 = vlaneseq }
  0x2d   :  { %385 = vmatprep.subr.bf16.mxu0 %v818_v11  ;;  %619 = vmatprep.subr.bf16.mxu1 %v821_v13  ;;  %v831_v22 = vld [vmem:[#allocation2 + $0x130] ss:$8 sps:$4 sm:$0xff]   ;;  %v839_v24 = vld [vmem:[#allocation2 + $0x144] ss:$8 sps:$4 sm:$0xff]   ;;  %v837_v26 = vld [vmem:[#allocation2 + $0x140] ss:$8 sps:$4 sm:$0xff]  }
  0x2e   :  { %v842_v27 = vld [vmem:[#allocation2 + $0x54] ss:$8 sps:$4 sm:$0xff]   ;;  %v840_v29 = vld [vmem:[#allocation2 + $0x50] ss:$8 sps:$4 sm:$0xff]   ;;  %v848_v31 = vld [vmem:[#allocation2 + $0x64] ss:$8 sps:$4 sm:$0xff]  }
  0x2f   :  { %v845_v28 = vld [vmem:[#allocation2 + $0x154] ss:$8 sps:$4 sm:$0xff]   ;;  %v843_v30 = vld [vmem:[#allocation2 + $0x150] ss:$8 sps:$4 sm:$0xff]   ;;  %v851_v32 = vld [vmem:[#allocation2 + $0x164] ss:$8 sps:$4 sm:$0xff]  }
  0x30   :  { %386 = vmatpush1.bf16.msra.mxu0 %v816_v12  ;;  %620 = vmatpush1.bf16.msra.mxu1 %v819_v14  ;;  %v846_v33 = vld [vmem:[#allocation2 + $0x60] ss:$8 sps:$4 sm:$0xff]   ;;  %v854_v35 = vld [vmem:[#allocation2 + $0x74] ss:$8 sps:$4 sm:$0xff]   ;;  %v852_v37 = vld [vmem:[#allocation2 + $0x70] ss:$8 sps:$4 sm:$0xff]  }
  0x31   :  { %387 = vmatprep.subr.bf16.mxu0 %v824_v15  ;;  %621 = vmatprep.subr.bf16.mxu1 %v827_v16  ;;  %v849_v34 = vld [vmem:[#allocation2 + $0x160] ss:$8 sps:$4 sm:$0xff]   ;;  %v857_v36 = vld [vmem:[#allocation2 + $0x174] ss:$8 sps:$4 sm:$0xff]   ;;  %v855_v38 = vld [vmem:[#allocation2 + $0x170] ss:$8 sps:$4 sm:$0xff]  }
  0x32   :  { %v860_v39 = vld [vmem:[#allocation2 + $0x84] ss:$8 sps:$4 sm:$0xff]   ;;  %v858_v41 = vld [vmem:[#allocation2 + $0x80] ss:$8 sps:$4 sm:$0xff]   ;;  %v866_v43 = vld [vmem:[#allocation2 + $0x94] ss:$8 sps:$4 sm:$0xff]  }
  0x33   :  { %v863_v40 = vld [vmem:[#allocation2 + $0x184] ss:$8 sps:$4 sm:$0xff]   ;;  %v861_v42 = vld [vmem:[#allocation2 + $0x180] ss:$8 sps:$4 sm:$0xff]   ;;  %v864_v44 = vld [vmem:[#allocation2 + $0x90] ss:$8 sps:$4 sm:$0xff]  }
  0x34   :  { %388 = vmatpush1.bf16.msra.mxu0 %v822_v17  ;;  %622 = vmatpush1.bf16.msra.mxu1 %v825_v18  ;;  %v869_v45 = vld [vmem:[#allocation2 + $0x194] ss:$8 sps:$4 sm:$0xff]   ;;  %v867_v46 = vld [vmem:[#allocation2 + $0x190] ss:$8 sps:$4 sm:$0xff]   ;;  %v872_v47 = vld [vmem:[#allocation2 + $0xa4] ss:$8 sps:$4 sm:$0xff]  }
  0x35   :  { %389 = vmatprep.subr.bf16.mxu0 %v830_v19  ;;  %623 = vmatprep.subr.bf16.mxu1 %v833_v20  ;;  %v875_v48 = vld [vmem:[#allocation2 + $0x1a4] ss:$8 sps:$4 sm:$0xff]   ;;  %v870_v49 = vld [vmem:[#allocation2 + $0xa0] ss:$8 sps:$4 sm:$0xff]   ;;  %v878_v51 = vld [vmem:[#allocation2 + $0xb4] ss:$8 sps:$4 sm:$0xff]  }
  0x36   :  { %v873_v50 = vld [vmem:[#allocation2 + $0x1a0] ss:$8 sps:$4 sm:$0xff]   ;;  %v881_v52 = vld [vmem:[#allocation2 + $0x1b4] ss:$8 sps:$4 sm:$0xff]   ;;  %v876_v53 = vld [vmem:[#allocation2 + $0xb0] ss:$8 sps:$4 sm:$0xff]  }
  0x37   :  { %v879_v54 = vld [vmem:[#allocation2 + $0x1b0] ss:$8 sps:$4 sm:$0xff]   ;;  %v884_v55 = vld [vmem:[#allocation2 + $0xc4] ss:$8 sps:$4 sm:$0xff]   ;;  %v882_v57 = vld [vmem:[#allocation2 + $0xc0] ss:$8 sps:$4 sm:$0xff]  }
  0x38   :  { %390 = vmatpush1.bf16.msra.mxu0 %v828_v21  ;;  %624 = vmatpush1.bf16.msra.mxu1 %v831_v22  ;;  %v887_v56 = vld [vmem:[#allocation2 + $0x1c4] ss:$8 sps:$4 sm:$0xff]   ;;  %v885_v58 = vld [vmem:[#allocation2 + $0x1c0] ss:$8 sps:$4 sm:$0xff]   ;;  %v890_v59 = vld [vmem:[#allocation2 + $0xd4] ss:$8 sps:$4 sm:$0xff]  }
  0x39   :  { %391 = vmatprep.subr.bf16.mxu0 %v836_v23  ;;  %625 = vmatprep.subr.bf16.mxu1 %v839_v24  ;;  %v893_v60 = vld [vmem:[#allocation2 + $0x1d4] ss:$8 sps:$4 sm:$0xff]   ;;  %v888_v61 = vld [vmem:[#allocation2 + $0xd0] ss:$8 sps:$4 sm:$0xff]   ;;  %v896_v63 = vld [vmem:[#allocation2 + $0xe4] ss:$8 sps:$4 sm:$0xff]  }
  0x3a   :  { %v891_v62 = vld [vmem:[#allocation2 + $0x1d0] ss:$8 sps:$4 sm:$0xff]   ;;  %v899_v0 = vld [vmem:[#allocation2 + $0x1e4] ss:$8 sps:$4 sm:$0xff]   ;;  %v894_v1 = vld [vmem:[#allocation2 + $0xe0] ss:$8 sps:$4 sm:$0xff]  }
  0x3b   :  { %v897_v2 = vld [vmem:[#allocation2 + $0x1e0] ss:$8 sps:$4 sm:$0xff]   ;;  %v902_v3 = vld [vmem:[#allocation2 + $0xf4] ss:$8 sps:$4 sm:$0xff]   ;;  %v900_v5 = vld [vmem:[#allocation2 + $0xf0] ss:$8 sps:$4 sm:$0xff]  }
  0x3c   :  { %392 = vmatpush1.bf16.msra.mxu0 %v834_v25  ;;  %626 = vmatpush1.bf16.msra.mxu1 %v837_v26  ;;  %v905_v4 = vld [vmem:[#allocation2 + $0x1f4] ss:$8 sps:$4 sm:$0xff]   ;;  %v903_v6 = vld [vmem:[#allocation2 + $0x1f0] ss:$8 sps:$4 sm:$0xff]   ;;  %v58_v8 = vshrl.u32 %v57_v7, 7  ;;  %vm721_vm2 = vcmask 15360  }
  0x3d   :  { %393 = vmatprep.subr.bf16.mxu0 %v842_v27  ;;  %627 = vmatprep.subr.bf16.mxu1 %v845_v28  ;;  %v44_v11 = vld [vmem:[#allocation4] ss:$8 sm:$0xf]  ;;  %v49_v7 = vld [vmem:[#allocation4 + $0x3] ss:$0 sm:$0xff] }
  0x3e   :  { %v59_v9 = vsub.s32 0, %v58_v8  ;;  %v67_v10 = vsub.s32 2, %v58_v8  ;;  %v63_v12 = vsub.s32 1, %v58_v8  ;;  %v71_v13 = vsub.s32 3, %v58_v8 }
  0x40   :  { %394 = vmatpush1.bf16.msra.mxu0 %v840_v29  ;;  %628 = vmatpush1.bf16.msra.mxu1 %v843_v30  ;;  %v60_v14 = vrot.slane %v44_v11, %v59_v9  ;;  %v68_v15 = vrot.slane %v44_v11, %v67_v10  ;;  %v64_v16 = vrot.slane %v44_v11, %v63_v12 }
  0x41   :  { %395 = vmatprep.subr.bf16.mxu0 %v848_v31  ;;  %629 = vmatprep.subr.bf16.mxu1 %v851_v32  ;;  %v72_v17 = vrot.slane %v44_v11, %v71_v13 }
  0x44   :  { %396 = vmatpush1.bf16.msra.mxu0 %v846_v33  ;;  %630 = vmatpush1.bf16.msra.mxu1 %v849_v34 }
  0x45   :  { %397 = vmatprep.subr.bf16.mxu0 %v854_v35  ;;  %631 = vmatprep.subr.bf16.mxu1 %v857_v36 }
  0x48   :  { %398 = vmatpush1.bf16.msra.mxu0 %v852_v37  ;;  %632 = vmatpush1.bf16.msra.mxu1 %v855_v38  ;;  %v46_v38 = vld [vmem:[#allocation4 + $0x1] ss:$8 sm:$0xf] }
  0x49   :  { %399 = vmatprep.subr.bf16.mxu0 %v860_v39  ;;  %633 = vmatprep.subr.bf16.mxu1 %v863_v40  ;;  %v662_v39 = vrot.slane %v46_v38, %v59_v9  ;;  %v670_v40 = vrot.slane %v46_v38, %v67_v10 }
  0x4c   :  { %400 = vmatpush1.bf16.msra.mxu0 %v858_v41  ;;  %634 = vmatpush1.bf16.msra.mxu1 %v861_v42  ;;  %v48_v41 = vld [vmem:[#allocation4 + $0x2] ss:$8 sm:$0xf]  ;;  %v666_v42 = vrot.slane %v46_v38, %v63_v12 }
  0x4d   :  { %401 = vmatprep.subr.bf16.mxu0 %v866_v43  ;;  %635 = vmatprep.subr.bf16.mxu1 %v869_v45  ;;  %v674_v43 = vrot.slane %v46_v38, %v71_v13 }
  0x50   :  { %402 = vmatpush1.bf16.msra.mxu0 %v864_v44  ;;  %636 = vmatpush1.bf16.msra.mxu1 %v867_v46 }
  0x51   :  { %403 = vmatprep.subr.bf16.mxu0 %v872_v47  ;;  %637 = vmatprep.subr.bf16.mxu1 %v875_v48  ;;  %v699_v48 = vrot.slane %v48_v41, %v67_v10 }
  0x54   :  { %404 = vmatpush1.bf16.msra.mxu0 %v870_v49  ;;  %638 = vmatpush1.bf16.msra.mxu1 %v873_v50 }
  0x55   :  { %405 = vmatprep.subr.bf16.mxu0 %v878_v51  ;;  %639 = vmatprep.subr.bf16.mxu1 %v881_v52  ;;  %v691_v51 = vrot.slane %v48_v41, %v59_v9 }
  0x58   :  { %406 = vmatpush1.bf16.msra.mxu0 %v876_v53  ;;  %640 = vmatpush1.bf16.msra.mxu1 %v879_v54  ;;  %v703_v54 = vrot.slane %v48_v41, %v71_v13 }
  0x59   :  { %407 = vmatprep.subr.bf16.mxu0 %v884_v55  ;;  %641 = vmatprep.subr.bf16.mxu1 %v887_v56 }
  0x5c   :  { %408 = vmatpush1.bf16.msra.mxu0 %v882_v57  ;;  %642 = vmatpush1.bf16.msra.mxu1 %v885_v58  ;;  %v695_v57 = vrot.slane %v48_v41, %v63_v12 }
  0x5d   :  { %409 = vmatprep.subr.bf16.mxu0 %v890_v59  ;;  %643 = vmatprep.subr.bf16.mxu1 %v893_v60 }
  0x60   :  { %410 = vmatpush1.bf16.msra.mxu0 %v888_v61  ;;  %644 = vmatpush1.bf16.msra.mxu1 %v891_v62 }
  0x61   :  { %411 = vmatprep.subr.bf16.mxu0 %v896_v63  ;;  %645 = vmatprep.subr.bf16.mxu1 %v899_v0 }
  0x64   :  { %412 = vmatpush1.bf16.msra.mxu0 %v894_v1  ;;  %646 = vmatpush1.bf16.msra.mxu1 %v897_v2 }
  0x65   :  { %413 = vmatprep.subr.bf16.mxu0 %v902_v3  ;;  %647 = vmatprep.subr.bf16.mxu1 %v905_v4 }
  0x68   :  { %414 = vmatpush1.bf16.msra.mxu0 %v900_v5  ;;  %648 = vmatpush1.bf16.msra.mxu1 %v903_v6 }
  0xfe   :  { %v135_v18 = vpop.f32.mrb[0].mxu0  ;;  %v176_v19 = vpop.f32.mrb[0].mxu1 }
  0xff   :  { %v136_v20 = vadd.f32 %v135_v18, %v60_v14  ;;  %v177_v21 = vadd.f32 %v176_v19, %v68_v15  ;;  %v137_v22 = vpop.f32.mrb[1].mxu0  ;;  %v178_v23 = vpop.f32.mrb[1].mxu1 }
 0x100   :  { %v138_v24 = vadd.f32 %v137_v22, %v64_v16  ;;  %v179_v25 = vadd.f32 %v178_v23, %v72_v17  ;;  %v139_v26 = vpop.f32.mrb[2].mxu0  ;;  %v180_v27 = vpop.f32.mrb[2].mxu1 }
 0x101   :  { %v183_v28 = vmax.f32 %v136_v20, 0.0  ;;  %v185_v29 = vmax.f32 %v177_v21, 0.0  ;;  %v140_v30 = vpop.f32.mrb[3].mxu0  ;;  %v181_v31 = vpop.f32.mrb[3].mxu1 }
 0x102   :  { %v184_v32 = vmax.f32 %v138_v24, 0.0  ;;  %v186_v33 = vmax.f32 %v179_v25, 0.0 }
 0x103   :  { %v189_v34 = vpack.c.bf16 %v185_v29, %v185_v29  ;;  %v187_v37 = vpack.c.bf16 %v183_v28, %v183_v28 }
 0x104   :  { %v188_v35 = vpack.c.bf16 %v184_v32, %v184_v32  ;;  %v190_v36 = vpack.c.bf16 %v186_v33, %v186_v33 }
 0x106   :  { %415 = vmatprep.mubr.bf16.mxu0 %v188_v35  ;;  %649 = vmatprep.mubr.bf16.mxu1 %v190_v36 }
 0x107   :  { %416 = vmatmul.mubr.bf16.vlgmr.msra.gmra.mrb[4].mxu0 %v187_v37  ;;  %650 = vmatmul.mubr.bf16.vlgmr.msra.gmra.mrb[4].mxu1 %v189_v34 }
 0x1da   :  { %v417_v44 = vpop.f32.mrb[4].mxu0  ;;  %v651_v45 = vpop.f32.mrb[4].mxu1 }
 0x1db   :  { %v679_v46 = vadd.f32 %v662_v39, %v417_v44  ;;  %v681_v47 = vadd.f32 %v670_v40, %v651_v45  ;;  %v419_v49 = vpop.f32.mrb[5].mxu0  ;;  %v653_v50 = vpop.f32.mrb[5].mxu1 }
 0x1dc   :  { %v680_v52 = vadd.f32 %v666_v42, %v419_v49  ;;  %v682_v53 = vadd.f32 %v674_v43, %v653_v50  ;;  %v421_v55 = vpop.f32.mrb[6].mxu0  ;;  %v655_v56 = vpop.f32.mrb[6].mxu1 }
 0x1dd   :  { %v683_v58 = vmax.f32 %v679_v46, 0.0  ;;  %v685_v59 = vmax.f32 %v681_v47, 0.0  ;;  %v422_v60 = vpop.f32.mrb[7].mxu0  ;;  %v656_v61 = vpop.f32.mrb[7].mxu1 }
 0x1de   :  { %v684_v62 = vmax.f32 %v680_v52, 0.0  ;;  %v686_v63 = vmax.f32 %v682_v53, 0.0 }
 0x1df   :  { %v710_v0 = vmul.f32 %v699_v48, %v685_v59  ;;  %v708_v1 = vmul.f32 %v691_v51, %v683_v58 }
 0x1e0   :  { %v711_v2 = vmul.f32 %v703_v54, %v686_v63  ;;  %v709_v3 = vmul.f32 %v695_v57, %v684_v62 }
 0x1e2   :  { %v712_v4 = vadd.f32 %v709_v3, %v708_v1  ;;  %v715_v5 = vadd.f32 %v711_v2, %v710_v0 }
 0x1e4   :  { %713 = vadd.xlane.f32.xlu0 %v712_v4 }
 0x1e8   :  { %716 = vadd.xlane.f32.xlu0 %v715_v5 }
 0x271   :  { %v714_v6 = vpop.xlane.xlu0 %713 }
 0x275   :  { %v717_v8 = vpop.xlane.xlu0 %716 }
 0x276   :  { %v719_v9 = vsel %vm718_vm1, %v714_v6, %v717_v8 }
 0x277   :  { %v720_v10 = vadd.f32 %v719_v9, %v49_v7 }
 0x279   :  { %722 = vst.msk [vmem:[%s1030_s4] sm:$0xff] %vm721_vm2, %v720_v10 }
 0x27a   :  { %727 = vsyncpa [#allocation3], 1 }
 0x27b   :  { %728 = vsyncpa [#allocation5], 1 }

</bundles_post_ra>
